<compile_context>
chip_gen: v7x
topology: tpu7x:2x2x1
jax: 0.10.0
libtpu: 0.0.40
codegen_flags: <defaults>
</compile_context>

<pallas_src>
import numpy as np
import jax
import jax.numpy as jnp
from jax.experimental import pallas as pl
from jax.experimental.pallas import tpu as pltpu


def _torch_linspace_long_indices(t_total: int, n_steps: int) -> list:
    """Replicate torch.linspace(0, t_total-1, n_steps).long() bit-exactly.

    torch.linspace (default float32) computes
        step   = (end - start) / (steps - 1)
        out[i] = start + i * step                  for i <  steps // 2
        out[i] = end   - (steps - 1 - i) * step    for i >= steps // 2
    in float32, and .long() truncates toward zero.
    """
    if n_steps <= 0:
        return []
    if n_steps == 1:
        return [0]
    start = np.float32(0.0)
    end = np.float32(t_total - 1)
    step = (end - start) / np.float32(n_steps - 1)
    halfway = n_steps // 2
    idx = []
    for i in range(n_steps):
        if i < halfway:
            v = start + step * np.float32(i)
        else:
            v = end - step * np.float32(n_steps - 1 - i)
        j = int(v)  # truncation toward zero == .long()
        idx.append(min(max(j, 0), t_total - 1))
    return idx


def _build_gather_kernel(indices, max_inflight: int):
    """Build an HBM->HBM gather kernel for a static temporal index list.

    Returns (kernel_fn, num_dma_semaphores).
    kernel signature: kernel(frames_hbm, out_hbm, dma_sems)
      frames_hbm : (C, T, HW)       raw HBM ref
      out_hbm    : (C, n_slow, HW)  raw HBM ref
    """
    n_slow = len(indices)
    contiguous = all(indices[t] == indices[0] + t for t in range(n_slow))

    if contiguous:
        start = indices[0]

        def kernel_single(frames_hbm, out_hbm, sems):
            # One DMA descriptor covers every slow frame.
            cp = pltpu.make_async_copy(
                frames_hbm.at[:, pl.ds(start, n_slow), :], out_hbm, sems.at[0]
            )
            cp.start()
            cp.wait()

        return kernel_single, 1

    window = max(1, min(max_inflight, n_slow))

    def kernel(frames_hbm, out_hbm, sems):
        # All indices are static -> constant DMA descriptors, fully unrolled.
        copies = [
            pltpu.make_async_copy(
                frames_hbm.at[:, pl.ds(src_t, 1), :],   # (C, 1, HW) at static T index
                out_hbm.at[:, pl.ds(t, 1), :],          # (C, 1, HW) at static T index
                sems.at[t % window],
            )
            for t, src_t in enumerate(indices)
        ]
        # Bounded in-flight window: keep the DMA engines saturated without
        # exceeding the outstanding-DMA / semaphore budget for large n_slow.
        for t in range(window):
            copies[t].start()
        for t in range(n_slow):
            copies[t].wait()
            nxt = t + window
            if nxt < n_slow:
                copies[nxt].start()

    return kernel, window


# Below this many bytes in the slow tensor, the pallas_call launch overhead
# dominates and XLA's fused jnp.take gather wins.
_PALLAS_MIN_BYTES = 1 << 20


def pack_pathway(frames: jax.Array, alpha: int, *, use_pallas=None,
                 max_inflight_dmas: int = 8):
    """JAX/Pallas equivalent of PackPathway.forward.

    frames: (C, T, H, W) array; alpha: static Python int.
    Returns [slow_pathway, fast_pathway] where
      slow_pathway: (C, T // alpha, H, W) = frames gathered at
                    torch.linspace(0, T-1, T // alpha).long()
      fast_pathway: frames (identity).
    """
    C, T, H, W = frames.shape
    n_slow = T // alpha
    fast_pathway = frames  # identity, no compute

    if n_slow == 0:
        # Degenerate (alpha > T): empty slow pathway, mirrors torch.
        return [jnp.zeros((C, 0, H, W), frames.dtype), fast_pathway]

    indices = _torch_linspace_long_indices(T, n_slow)

    # alpha == 1 -> indices are exactly 0..T-1: slow pathway IS frames.
    if indices == list(range(T)):
        return [frames, fast_pathway]

    itemsize = jnp.dtype(frames.dtype).itemsize
    slow_bytes = C * n_slow * H * W * itemsize
    if use_pallas is None:
        use_pallas = slow_bytes >= _PALLAS_MIN_BYTES

    if not use_pallas:
        # Tiny input: let XLA fuse the static-index gather downstream.
        slow = jnp.take(frames, jnp.asarray(indices, dtype=jnp.int32), axis=1)
        return [slow, fast_pathway]

    # Free contiguous reshape -> each frame is C dense runs of H*W elements.
    frames_flat = frames.reshape(C, T, H * W)

    kernel, n_sems = _build_gather_kernel(indices, max_inflight_dmas)

    cost = pl.CostEstimate(
        flops=0,
        transcendentals=0,
        bytes_accessed=2 * slow_bytes,
    )

    slow_flat = pl.pallas_call(
        kernel,
        out_shape=jax.ShapeDtypeStruct((C, n_slow, H * W), frames.dtype),
        grid=(1,),
        in_specs=[pl.BlockSpec(memory_space=pl.ANY)],   # raw HBM ref, no auto-DMA
        out_specs=pl.BlockSpec(memory_space=pl.ANY),    # raw HBM ref, no auto-DMA
        scratch_shapes=[pltpu.SemaphoreType.DMA((n_sems,))],
        compiler_params=pltpu.CompilerParams(
            dimension_semantics=("arbitrary",),
        ),
        cost_estimate=cost,
    )(frames_flat)

    slow_pathway = slow_flat.reshape(C, n_slow, H, W)
    return [slow_pathway, fast_pathway]


if __name__ == "__main__":
    key = jax.random.PRNGKey(0)

    # Main test: C=4, T=8, H=W=16 — exercise the windowed multi-DMA path
    # with both a non-uniform index set (alpha=2 -> [0,2,4,7]) and a
    # 2-frame set (alpha=4 -> [0,7]).
    C, T, H, W = 4, 8, 16, 16
    frames = jax.random.normal(key, (C, T, H, W), dtype=jnp.float32)

    for alpha in (2, 4):
        n_slow = T // alpha
        idx = _torch_linspace_long_indices(T, n_slow)
        slow, fast = pack_pathway(frames, alpha, use_pallas=True)
        slow = jax.block_until_ready(slow)
        fast = jax.block_until_ready(fast)
        ref_slow = jnp.take(frames, jnp.asarray(idx, dtype=jnp.int32), axis=1)
        assert slow.shape == (C, n_slow, H, W)
        assert fast.shape == (C, T, H, W)
        np.testing.assert_array_equal(np.asarray(slow), np.asarray(ref_slow))
        np.testing.assert_array_equal(np.asarray(fast), np.asarray(frames))

    # Exercise the single-DMA (contiguous / single-frame) fast path: T=3,
    # alpha=2 -> n_slow=1, index [0].
    key2 = jax.random.PRNGKey(0)
    frames2 = jax.random.normal(key2, (2, 3, 8, 8), dtype=jnp.float32)
    slow2, fast2 = pack_pathway(frames2, 2, use_pallas=True)
    slow2 = jax.block_until_ready(slow2)
    np.testing.assert_array_equal(np.asarray(slow2), np.asarray(frames2[:, 0:1]))
    np.testing.assert_array_equal(np.asarray(fast2), np.asarray(frames2))

    # Auto-dispatch path (tiny input -> jnp.take) must agree with the kernel.
    slow_auto, _ = pack_pathway(frames, 2)
    slow_auto = jax.block_until_ready(slow_auto)
    ref_auto = jnp.take(
        frames, jnp.asarray(_torch_linspace_long_indices(T, T // 2), dtype=jnp.int32), axis=1
    )
    np.testing.assert_array_equal(np.asarray(slow_auto), np.asarray(ref_auto))

    print("KERNEL_OK")
</pallas_src>

<mosaic_0001>
module attributes {stable_mosaic.version = 11 : i64} {
  func.func @kernel(%arg0: i32, %arg1: memref<4x8x256xf32, #tpu.memory_space<any>>, %arg2: memref<4x4x256xf32, #tpu.memory_space<any>>, %arg3: memref<4x!tpu.dma_semaphore, #tpu.memory_space<semaphore_mem>>) attributes {dimension_semantics = [#tpu.dimension_semantics<arbitrary>], iteration_bounds = array<i64: 1>, scalar_prefetch = 0 : i64, scratch_operands = 1 : i64, tpu.core_type = #tpu.core_type<tc>, window_params = [{}, {}]} {
    %c0_i32 = arith.constant 0 : i32
    %c0_i32_0 = arith.constant 0 : i32
    %c0_i32_1 = arith.constant 0 : i32
    %c0_i32_2 = arith.constant 0 : i32
    %0 = tpu.memref_slice %arg1[%c0_i32_0, %c0_i32_1, %c0_i32_2] : memref<4x8x256xf32, #tpu.memory_space<any>> -> memref<4x1x256xf32, #tpu.memory_space<any>>
    %c0_i32_3 = arith.constant 0 : i32
    %c0_i32_4 = arith.constant 0 : i32
    %c0_i32_5 = arith.constant 0 : i32
    %1 = tpu.memref_slice %arg2[%c0_i32_3, %c0_i32_4, %c0_i32_5] : memref<4x4x256xf32, #tpu.memory_space<any>> -> memref<4x1x256xf32, #tpu.memory_space<any>>
    %2 = tpu.memref_slice %arg3[%c0_i32] : memref<4x!tpu.dma_semaphore, #tpu.memory_space<semaphore_mem>> -> memref<1x!tpu.dma_semaphore, #tpu.memory_space<semaphore_mem>>
    %3 = tpu.memref_squeeze %2 : memref<1x!tpu.dma_semaphore, #tpu.memory_space<semaphore_mem>> -> memref<!tpu.dma_semaphore, #tpu.memory_space<semaphore_mem>>
    tpu.enqueue_dma source(%0 : memref<4x1x256xf32, #tpu.memory_space<any>>) target(%1 : memref<4x1x256xf32, #tpu.memory_space<any>>) target_semaphore(%3 : memref<!tpu.dma_semaphore, #tpu.memory_space<semaphore_mem>>)
    %c1_i32 = arith.constant 1 : i32
    %c0_i32_6 = arith.constant 0 : i32
    %c2_i32 = arith.constant 2 : i32
    %c0_i32_7 = arith.constant 0 : i32
    %4 = tpu.memref_slice %arg1[%c0_i32_6, %c2_i32, %c0_i32_7] : memref<4x8x256xf32, #tpu.memory_space<any>> -> memref<4x1x256xf32, #tpu.memory_space<any>>
    %c0_i32_8 = arith.constant 0 : i32
    %c1_i32_9 = arith.constant 1 : i32
    %c0_i32_10 = arith.constant 0 : i32
    %5 = tpu.memref_slice %arg2[%c0_i32_8, %c1_i32_9, %c0_i32_10] : memref<4x4x256xf32, #tpu.memory_space<any>> -> memref<4x1x256xf32, #tpu.memory_space<any>>
    %6 = tpu.memref_slice %arg3[%c1_i32] : memref<4x!tpu.dma_semaphore, #tpu.memory_space<semaphore_mem>> -> memref<1x!tpu.dma_semaphore, #tpu.memory_space<semaphore_mem>>
    %7 = tpu.memref_squeeze %6 : memref<1x!tpu.dma_semaphore, #tpu.memory_space<semaphore_mem>> -> memref<!tpu.dma_semaphore, #tpu.memory_space<semaphore_mem>>
    tpu.enqueue_dma source(%4 : memref<4x1x256xf32, #tpu.memory_space<any>>) target(%5 : memref<4x1x256xf32, #tpu.memory_space<any>>) target_semaphore(%7 : memref<!tpu.dma_semaphore, #tpu.memory_space<semaphore_mem>>)
    %c2_i32_11 = arith.constant 2 : i32
    %c0_i32_12 = arith.constant 0 : i32
    %c4_i32 = arith.constant 4 : i32
    %c0_i32_13 = arith.constant 0 : i32
    %8 = tpu.memref_slice %arg1[%c0_i32_12, %c4_i32, %c0_i32_13] : memref<4x8x256xf32, #tpu.memory_space<any>> -> memref<4x1x256xf32, #tpu.memory_space<any>>
    %c0_i32_14 = arith.constant 0 : i32
    %c2_i32_15 = arith.constant 2 : i32
    %c0_i32_16 = arith.constant 0 : i32
    %9 = tpu.memref_slice %arg2[%c0_i32_14, %c2_i32_15, %c0_i32_16] : memref<4x4x256xf32, #tpu.memory_space<any>> -> memref<4x1x256xf32, #tpu.memory_space<any>>
    %10 = tpu.memref_slice %arg3[%c2_i32_11] : memref<4x!tpu.dma_semaphore, #tpu.memory_space<semaphore_mem>> -> memref<1x!tpu.dma_semaphore, #tpu.memory_space<semaphore_mem>>
    %11 = tpu.memref_squeeze %10 : memref<1x!tpu.dma_semaphore, #tpu.memory_space<semaphore_mem>> -> memref<!tpu.dma_semaphore, #tpu.memory_space<semaphore_mem>>
    tpu.enqueue_dma source(%8 : memref<4x1x256xf32, #tpu.memory_space<any>>) target(%9 : memref<4x1x256xf32, #tpu.memory_space<any>>) target_semaphore(%11 : memref<!tpu.dma_semaphore, #tpu.memory_space<semaphore_mem>>)
    %c3_i32 = arith.constant 3 : i32
    %c0_i32_17 = arith.constant 0 : i32
    %c7_i32 = arith.constant 7 : i32
    %c0_i32_18 = arith.constant 0 : i32
    %12 = tpu.memref_slice %arg1[%c0_i32_17, %c7_i32, %c0_i32_18] : memref<4x8x256xf32, #tpu.memory_space<any>> -> memref<4x1x256xf32, #tpu.memory_space<any>>
    %c0_i32_19 = arith.constant 0 : i32
    %c3_i32_20 = arith.constant 3 : i32
    %c0_i32_21 = arith.constant 0 : i32
    %13 = tpu.memref_slice %arg2[%c0_i32_19, %c3_i32_20, %c0_i32_21] : memref<4x4x256xf32, #tpu.memory_space<any>> -> memref<4x1x256xf32, #tpu.memory_space<any>>
    %14 = tpu.memref_slice %arg3[%c3_i32] : memref<4x!tpu.dma_semaphore, #tpu.memory_space<semaphore_mem>> -> memref<1x!tpu.dma_semaphore, #tpu.memory_space<semaphore_mem>>
    %15 = tpu.memref_squeeze %14 : memref<1x!tpu.dma_semaphore, #tpu.memory_space<semaphore_mem>> -> memref<!tpu.dma_semaphore, #tpu.memory_space<semaphore_mem>>
    tpu.enqueue_dma source(%12 : memref<4x1x256xf32, #tpu.memory_space<any>>) target(%13 : memref<4x1x256xf32, #tpu.memory_space<any>>) target_semaphore(%15 : memref<!tpu.dma_semaphore, #tpu.memory_space<semaphore_mem>>)
    %c0_i32_22 = arith.constant 0 : i32
    %c0_i32_23 = arith.constant 0 : i32
    %c0_i32_24 = arith.constant 0 : i32
    %c0_i32_25 = arith.constant 0 : i32
    %16 = tpu.memref_slice %arg1[%c0_i32_23, %c0_i32_24, %c0_i32_25] : memref<4x8x256xf32, #tpu.memory_space<any>> -> memref<4x1x256xf32, #tpu.memory_space<any>>
    %c0_i32_26 = arith.constant 0 : i32
    %c0_i32_27 = arith.constant 0 : i32
    %c0_i32_28 = arith.constant 0 : i32
    %17 = tpu.memref_slice %arg2[%c0_i32_26, %c0_i32_27, %c0_i32_28] : memref<4x4x256xf32, #tpu.memory_space<any>> -> memref<4x1x256xf32, #tpu.memory_space<any>>
    %18 = tpu.memref_slice %arg3[%c0_i32_22] : memref<4x!tpu.dma_semaphore, #tpu.memory_space<semaphore_mem>> -> memref<1x!tpu.dma_semaphore, #tpu.memory_space<semaphore_mem>>
    %19 = tpu.memref_squeeze %18 : memref<1x!tpu.dma_semaphore, #tpu.memory_space<semaphore_mem>> -> memref<!tpu.dma_semaphore, #tpu.memory_space<semaphore_mem>>
    tpu.wait_dma2 semaphore(%19 : memref<!tpu.dma_semaphore, #tpu.memory_space<semaphore_mem>>) src(%16 : memref<4x1x256xf32, #tpu.memory_space<any>>) dst(%17 : memref<4x1x256xf32, #tpu.memory_space<any>>)
    %c1_i32_29 = arith.constant 1 : i32
    %c0_i32_30 = arith.constant 0 : i32
    %c2_i32_31 = arith.constant 2 : i32
    %c0_i32_32 = arith.constant 0 : i32
    %20 = tpu.memref_slice %arg1[%c0_i32_30, %c2_i32_31, %c0_i32_32] : memref<4x8x256xf32, #tpu.memory_space<any>> -> memref<4x1x256xf32, #tpu.memory_space<any>>
    %c0_i32_33 = arith.constant 0 : i32
    %c1_i32_34 = arith.constant 1 : i32
    %c0_i32_35 = arith.constant 0 : i32
    %21 = tpu.memref_slice %arg2[%c0_i32_33, %c1_i32_34, %c0_i32_35] : memref<4x4x256xf32, #tpu.memory_space<any>> -> memref<4x1x256xf32, #tpu.memory_space<any>>
    %22 = tpu.memref_slice %arg3[%c1_i32_29] : memref<4x!tpu.dma_semaphore, #tpu.memory_space<semaphore_mem>> -> memref<1x!tpu.dma_semaphore, #tpu.memory_space<semaphore_mem>>
    %23 = tpu.memref_squeeze %22 : memref<1x!tpu.dma_semaphore, #tpu.memory_space<semaphore_mem>> -> memref<!tpu.dma_semaphore, #tpu.memory_space<semaphore_mem>>
    tpu.wait_dma2 semaphore(%23 : memref<!tpu.dma_semaphore, #tpu.memory_space<semaphore_mem>>) src(%20 : memref<4x1x256xf32, #tpu.memory_space<any>>) dst(%21 : memref<4x1x256xf32, #tpu.memory_space<any>>)
    %c2_i32_36 = arith.constant 2 : i32
    %c0_i32_37 = arith.constant 0 : i32
    %c4_i32_38 = arith.constant 4 : i32
    %c0_i32_39 = arith.constant 0 : i32
    %24 = tpu.memref_slice %arg1[%c0_i32_37, %c4_i32_38, %c0_i32_39] : memref<4x8x256xf32, #tpu.memory_space<any>> -> memref<4x1x256xf32, #tpu.memory_space<any>>
    %c0_i32_40 = arith.constant 0 : i32
    %c2_i32_41 = arith.constant 2 : i32
    %c0_i32_42 = arith.constant 0 : i32
    %25 = tpu.memref_slice %arg2[%c0_i32_40, %c2_i32_41, %c0_i32_42] : memref<4x4x256xf32, #tpu.memory_space<any>> -> memref<4x1x256xf32, #tpu.memory_space<any>>
    %26 = tpu.memref_slice %arg3[%c2_i32_36] : memref<4x!tpu.dma_semaphore, #tpu.memory_space<semaphore_mem>> -> memref<1x!tpu.dma_semaphore, #tpu.memory_space<semaphore_mem>>
    %27 = tpu.memref_squeeze %26 : memref<1x!tpu.dma_semaphore, #tpu.memory_space<semaphore_mem>> -> memref<!tpu.dma_semaphore, #tpu.memory_space<semaphore_mem>>
    tpu.wait_dma2 semaphore(%27 : memref<!tpu.dma_semaphore, #tpu.memory_space<semaphore_mem>>) src(%24 : memref<4x1x256xf32, #tpu.memory_space<any>>) dst(%25 : memref<4x1x256xf32, #tpu.memory_space<any>>)
    %c3_i32_43 = arith.constant 3 : i32
    %c0_i32_44 = arith.constant 0 : i32
    %c7_i32_45 = arith.constant 7 : i32
    %c0_i32_46 = arith.constant 0 : i32
    %28 = tpu.memref_slice %arg1[%c0_i32_44, %c7_i32_45, %c0_i32_46] : memref<4x8x256xf32, #tpu.memory_space<any>> -> memref<4x1x256xf32, #tpu.memory_space<any>>
    %c0_i32_47 = arith.constant 0 : i32
    %c3_i32_48 = arith.constant 3 : i32
    %c0_i32_49 = arith.constant 0 : i32
    %29 = tpu.memref_slice %arg2[%c0_i32_47, %c3_i32_48, %c0_i32_49] : memref<4x4x256xf32, #tpu.memory_space<any>> -> memref<4x1x256xf32, #tpu.memory_space<any>>
    %30 = tpu.memref_slice %arg3[%c3_i32_43] : memref<4x!tpu.dma_semaphore, #tpu.memory_space<semaphore_mem>> -> memref<1x!tpu.dma_semaphore, #tpu.memory_space<semaphore_mem>>
    %31 = tpu.memref_squeeze %30 : memref<1x!tpu.dma_semaphore, #tpu.memory_space<semaphore_mem>> -> memref<!tpu.dma_semaphore, #tpu.memory_space<semaphore_mem>>
    tpu.wait_dma2 semaphore(%31 : memref<!tpu.dma_semaphore, #tpu.memory_space<semaphore_mem>>) src(%28 : memref<4x1x256xf32, #tpu.memory_space<any>>) dst(%29 : memref<4x1x256xf32, #tpu.memory_space<any>>)
    return
  }
}

</mosaic_0001>

<bundles_post_ra>
// kernel: tpu_custom_call.1
= control target key start
LH: loop header
LB: loop body
LE: loop exit
PB: predicated region body
PF: predicated region fallthrough
CT: control target
= control target key end

     0   :  { %s152_s6 = smov 128   ;;  %s153_s7 = smov 64   ;;  %s202_s0 = inlined_call_operand.hbm [shape: f32[4,8,256], index: 0, kind: input, shape index: {}]   ;;  %s203_s1 = inlined_call_operand.hbm [shape: f32[4,4,256], index: 1, kind: output, shape index: {}]  }
   0x1   :  { %18 = sst [smem:[#allocation4]] %s152_s6  ;;  %s154_s8 = smov 1  }
   0x2   :  { %20 = sst [smem:[#allocation4 + $0x1]] %s153_s7  ;;  %s25_s11 = scalar_lea.hbm %s202_s0, 32 }
   0x3   :  { %22 = sst [smem:[#allocation4 + $0x2]] %s154_s8  ;;  %s155_s12 = smov [#allocation2]  }
   0x4   :  { %s156_s13 = smov [#allocation3]   ;;  %s157_s14 = smov 0  }
   0x5   :  { %24 = dma.general %s202_s0, 128, %s203_s1, %s155_s12, %s156_s13, [#allocation4], %s157_s14, 0  }
   0x6   :  { %40 = sst [smem:[#allocation6]] %s152_s6  ;;  %s26_s21 = scalar_lea.hbm %s203_s1, 16 }
   0x7   :  { %42 = sst [smem:[#allocation6 + $0x1]] %s153_s7  ;;  %s158_s22 = smov [#allocation2 + $0x1]  }
   0x8   :  { %44 = sst [smem:[#allocation6 + $0x2]] %s154_s8  ;;  %s159_s23 = smov [#allocation5]  }
   0x9   :  { %46 = dma.general %s25_s11, 128, %s26_s21, %s158_s22, %s159_s23, [#allocation6], %s157_s14, 0  }
   0xa   :  { %62 = sst [smem:[#allocation8]] %s152_s6  ;;  %s47_s26 = scalar_lea.hbm %s202_s0, 64 }
   0xb   :  { %64 = sst [smem:[#allocation8 + $0x1]] %s153_s7  ;;  %s48_s29 = scalar_lea.hbm %s203_s1, 32 }
   0xc   :  { %66 = sst [smem:[#allocation8 + $0x2]] %s154_s8  ;;  %s69_s3 = scalar_lea.hbm %s202_s0, 112 }
   0xd   :  { %s160_s4 = smov [#allocation2 + $0x2]   ;;  %s161_s5 = smov [#allocation7]  }
   0xe   :  { %68 = dma.general %s47_s26, 128, %s48_s29, %s160_s4, %s161_s5, [#allocation8], %s157_s14, 0  }
   0xf   :  { %84 = sst [smem:[#allocation10]] %s152_s6  ;;  %s70_s11 = scalar_lea.hbm %s203_s1, 48 }
  0x10   :  { %86 = sst [smem:[#allocation10 + $0x1]] %s153_s7  ;;  %s162_s12 = smov [#allocation2 + $0x3]  }
  0x11   :  { %88 = sst [smem:[#allocation10 + $0x2]] %s154_s8  ;;  %s163_s13 = smov [#allocation9]  }
  0x12   :  { %90 = dma.general %s69_s3, 128, %s70_s11, %s162_s12, %s163_s13, [#allocation10], %s157_s14, 0  }
  0x13   :  { %144 = dma.done.wait [#allocation2], 128 }
  0x14   :  { %145 = vsyncadd [#allocation2], 4294967168 }
  0x15   :  { %146 = dma.done.wait [#allocation2 + $0x1], 128 }
  0x16   :  { %147 = vsyncadd [#allocation2 + $0x1], 4294967168 }
  0x17   :  { %148 = dma.done.wait [#allocation2 + $0x2], 128 }
  0x18   :  { %149 = vsyncadd [#allocation2 + $0x2], 4294967168 }
  0x19   :  { %150 = dma.done.wait [#allocation2 + $0x3], 128 }
  0x1a   :  { %151 = vsyncadd [#allocation2 + $0x3], 4294967168 }
  0x1b   :  { %101 = vsyncmov [#allocation2] }
  0x1e   :  { %s102_s0 = vpop.sfrf %101 }
  0x1f   :  { %p128_p0 = scmp.ne.s32.totalorder %s102_s0, 0 }
  0x21   :  { %106 = shalt.err (%p128_p0)  }
  0x22   :  { %108 = vsyncmov [#allocation2 + $0x1] }
  0x25   :  { %s109_s6 = vpop.sfrf %108 }
  0x26   :  { %p129_p1 = scmp.ne.s32.totalorder %s109_s6, 0 }
  0x28   :  { %113 = shalt.err (%p129_p1)  }
  0x29   :  { %115 = vsyncmov [#allocation2 + $0x2] }
  0x2c   :  { %s116_s1 = vpop.sfrf %115 }
  0x2d   :  { %p130_p2 = scmp.ne.s32.totalorder %s116_s1, 0 }
  0x2f   :  { %120 = shalt.err (%p130_p2)  }
  0x30   :  { %122 = vsyncmov [#allocation2 + $0x3] }
  0x33   :  { %s123_s7 = vpop.sfrf %122 }
  0x34   :  { %p131_p3 = scmp.ne.s32.totalorder %s123_s7, 0 }
  0x36   :  { %127 = shalt.err (%p131_p3)  }

</bundles_post_ra>
